<compile_context>
chip_gen: v5e
topology: v5e:2x2
jax: 0.10.0
libtpu: 0.0.40
codegen_flags: <defaults>
</compile_context>

<pallas_src>
import jax
import jax.numpy as jnp
from jax.experimental import pallas as pl
from jax.experimental.pallas import tpu as pltpu

LEAKY_SLOPE = 0.01  # torch F.leaky_relu default negative_slope
SUBLANE = 8


def _round_up(x, m):
    return ((x + m - 1) // m) * m


def mlp_kernel(x_ref, w1_ref, b1_ref, w2_ref, b2_ref, o_ref):
    # fc1: [tb, n_in] @ [n_in, h_pad] -> [tb, h_pad], f32 accumulation on MXU.
    h = jnp.dot(x_ref[...], w1_ref[...], preferred_element_type=jnp.float32)
    h = h + b1_ref[...]                         # [1, h_pad] broadcast over batch
    h = jnp.where(h > 0, h, LEAKY_SLOPE * h)    # leaky_relu in f32 on the VPU
    # fc2: [tb, h_pad] @ [h_pad, n_out] -> [tb, n_out]
    out = jnp.dot(h.astype(w2_ref.dtype), w2_ref[...],
                  preferred_element_type=jnp.float32)
    o_ref[...] = (out + b2_ref[...]).astype(o_ref.dtype)


def _prep_params(w1, b1, w2, b2, use_bf16):
    """Pad hidden to a sublane multiple (8) and transpose weights to [in, out]."""
    hidden = w1.shape[0]
    n_out = w2.shape[0]
    h_pad = _round_up(hidden, SUBLANE)
    w1t = jnp.pad(w1, ((0, h_pad - hidden), (0, 0))).T        # [n_in, h_pad]
    w2t = jnp.pad(w2, ((0, 0), (0, h_pad - hidden))).T        # [h_pad, n_out]
    b1p = jnp.pad(b1, (0, h_pad - hidden)).reshape(1, h_pad)  # [1, h_pad] (f32)
    b2p = b2.reshape(1, n_out)                                # [1, n_out] (f32)
    if use_bf16:
        w1t = w1t.astype(jnp.bfloat16)
        w2t = w2t.astype(jnp.bfloat16)
    return w1t, b1p, w2t, b2p, h_pad


def mlp_forward(x, w1, b1, w2, b2, *, batch_tile=1024,
                small_batch_threshold=512, use_bf16=False):
    """x: [B, n_in]; w1: [hidden, n_in]; b1: [hidden]; w2: [n_out, hidden]; b2: [n_out]."""
    B, n_in = x.shape
    n_out = w2.shape[0]
    out_dtype = x.dtype

    w1t, b1p, w2t, b2p, h_pad = _prep_params(w1, b1, w2, b2, use_bf16)
    if use_bf16:
        x = x.astype(jnp.bfloat16)   # halves the dominant HBM read; f32 accumulate

    if B <= small_batch_threshold:
        # Tiny problem: whole working set is a few KB -> everything resident in
        # VMEM, no grid, no software-pipeline overhead.
        vmem = pl.BlockSpec(memory_space=pltpu.MemorySpace.VMEM)
        return pl.pallas_call(
            mlp_kernel,
            out_shape=jax.ShapeDtypeStruct((B, n_out), out_dtype),
            in_specs=[vmem] * 5,
            out_specs=vmem,
        )(x, w1t, b1p, w2t, b2p)

    # Large batch: stream batch tiles only; weights/biases stay VMEM-resident
    # via constant index_maps.  No batch padding: the ragged last block's
    # stores are masked by Pallas.
    tb = min(_round_up(batch_tile, SUBLANE),
             _round_up(pl.cdiv(B, 2), SUBLANE))   # keep >= 2 grid steps (v7x megacore)
    grid = (pl.cdiv(B, tb),)
    return pl.pallas_call(
        mlp_kernel,
        out_shape=jax.ShapeDtypeStruct((B, n_out), out_dtype),
        grid=grid,
        in_specs=[
            pl.BlockSpec((tb, n_in), lambda i: (i, 0)),
            pl.BlockSpec((n_in, h_pad), lambda i: (0, 0)),
            pl.BlockSpec((1, h_pad), lambda i: (0, 0)),
            pl.BlockSpec((h_pad, n_out), lambda i: (0, 0)),
            pl.BlockSpec((1, n_out), lambda i: (0, 0)),
        ],
        out_specs=pl.BlockSpec((tb, n_out), lambda i: (i, 0)),
        compiler_params=pltpu.CompilerParams(
            dimension_semantics=("parallel",)),
    )(x, w1t, b1p, w2t, b2p)


def mlp_ref(x, w1, b1, w2, b2):
    h = x @ w1.T + b1
    h = jnp.where(h > 0, h, LEAKY_SLOPE * h)
    return h @ w2.T + b2


if __name__ == "__main__":
    n_in, n_out, hidden = 32, 4, 5  # module hard-codes hidden=5

    key = jax.random.PRNGKey(0)
    kx, kw1, kb1, kw2, kb2, kx2 = jax.random.split(key, 6)

    # Deterministic params (mimic torch's uniform(-1/sqrt(fan_in), ...))
    lim1 = 1.0 / jnp.sqrt(jnp.float32(n_in))
    w1 = jax.random.uniform(kw1, (hidden, n_in), jnp.float32, -lim1, lim1)
    b1 = jax.random.uniform(kb1, (hidden,), jnp.float32, -lim1, lim1)
    lim2 = 1.0 / jnp.sqrt(jnp.float32(hidden))
    w2 = jax.random.uniform(kw2, (n_out, hidden), jnp.float32, -lim2, lim2)
    b2 = jax.random.uniform(kb2, (n_out,), jnp.float32, -lim2, lim2)

    # --- Small batch: no-grid, pure-VMEM path --------------------------------
    batch = 8
    x = jax.random.normal(kx, (batch, n_in), dtype=jnp.float32)
    out = mlp_forward(x, w1, b1, w2, b2)
    jax.block_until_ready(out)
    assert out.shape == (batch, n_out)
    assert jnp.allclose(out, mlp_ref(x, w1, b1, w2, b2), atol=1e-5, rtol=1e-5)

    # --- Larger batch: batch-tiled, weight-resident, ragged-grid path --------
    big_batch = 1000  # non-multiple of the tile -> exercises masked last block
    x_big = jax.random.normal(kx2, (big_batch, n_in), dtype=jnp.float32)
    out_big = mlp_forward(x_big, w1, b1, w2, b2)
    jax.block_until_ready(out_big)
    assert out_big.shape == (big_batch, n_out)
    ref_big = mlp_ref(x_big, w1, b1, w2, b2)
    assert jnp.allclose(out_big, ref_big, atol=1e-5, rtol=1e-5)

    # --- Optional bf16-input path (f32 accumulation), looser tolerance -------
    out_bf16 = mlp_forward(x_big, w1, b1, w2, b2, use_bf16=True)
    jax.block_until_ready(out_bf16)
    assert out_bf16.shape == (big_batch, n_out)
    assert jnp.allclose(out_bf16.astype(jnp.float32), ref_big, atol=5e-2, rtol=5e-2)

    print("KERNEL_OK")
</pallas_src>

<mosaic_0001>
module attributes {stable_mosaic.version = 11 : i64} {
  func.func @mlp_kernel(%arg0: memref<8x32xf32, #tpu.memory_space<vmem>>, %arg1: memref<32x8xf32, #tpu.memory_space<vmem>>, %arg2: memref<1x8xf32, #tpu.memory_space<vmem>>, %arg3: memref<8x4xf32, #tpu.memory_space<vmem>>, %arg4: memref<1x4xf32, #tpu.memory_space<vmem>>, %arg5: memref<8x4xf32, #tpu.memory_space<vmem>>) attributes {dimension_semantics = [], scalar_prefetch = 0 : i64, scratch_operands = 0 : i64, tpu.core_type = #tpu.core_type<tc>} {
    %c0 = arith.constant 0 : index
    %c0_0 = arith.constant 0 : index
    %0 = vector.load %arg0[%c0, %c0_0] : memref<8x32xf32, #tpu.memory_space<vmem>>, vector<8x32xf32>
    %c0_1 = arith.constant 0 : index
    %c0_2 = arith.constant 0 : index
    %1 = vector.load %arg1[%c0_1, %c0_2] : memref<32x8xf32, #tpu.memory_space<vmem>>, vector<32x8xf32>
    %cst = arith.constant dense<0.000000e+00> : vector<8x8xf32>
    %2 = tpu.matmul %0, %1, %cst {dimension_numbers = #tpu.dot_dimension_numbers<[1], [0], [0], [1], [0, 0, 1, 1], [], []>} : vector<8x32xf32>, vector<32x8xf32>, vector<8x8xf32> -> vector<8x8xf32>
    %c0_3 = arith.constant 0 : index
    %c0_4 = arith.constant 0 : index
    %3 = vector.load %arg2[%c0_3, %c0_4] : memref<1x8xf32, #tpu.memory_space<vmem>>, vector<1x8xf32>
    %4 = vector.broadcast %3 : vector<1x8xf32> to vector<8x8xf32>
    %5 = arith.addf %2, %4 : vector<8x8xf32>
    %cst_5 = arith.constant 0.000000e+00 : f32
    %6 = vector.broadcast %cst_5 : f32 to vector<8x8xf32>
    %7 = arith.cmpf ogt, %5, %6 : vector<8x8xf32>
    %cst_6 = arith.constant 0.00999999977 : f32
    %8 = vector.broadcast %cst_6 : f32 to vector<8x8xf32>
    %9 = arith.mulf %8, %5 : vector<8x8xf32>
    %10 = arith.select %7, %5, %9 : vector<8x8xi1>, vector<8x8xf32>
    %c0_7 = arith.constant 0 : index
    %c0_8 = arith.constant 0 : index
    %11 = vector.load %arg3[%c0_7, %c0_8] : memref<8x4xf32, #tpu.memory_space<vmem>>, vector<8x4xf32>
    %cst_9 = arith.constant dense<0.000000e+00> : vector<8x4xf32>
    %12 = tpu.matmul %10, %11, %cst_9 {dimension_numbers = #tpu.dot_dimension_numbers<[1], [0], [0], [1], [0, 0, 1, 1], [], []>} : vector<8x8xf32>, vector<8x4xf32>, vector<8x4xf32> -> vector<8x4xf32>
    %c0_10 = arith.constant 0 : index
    %c0_11 = arith.constant 0 : index
    %13 = vector.load %arg4[%c0_10, %c0_11] : memref<1x4xf32, #tpu.memory_space<vmem>>, vector<1x4xf32>
    %14 = vector.broadcast %13 : vector<1x4xf32> to vector<8x4xf32>
    %15 = arith.addf %12, %14 : vector<8x4xf32>
    %c0_12 = arith.constant 0 : index
    %c0_13 = arith.constant 0 : index
    %16 = vector.load %arg5[%c0_12, %c0_13] : memref<8x4xf32, #tpu.memory_space<vmem>>, vector<8x4xf32>
    tpu.vector_store %arg5[%c0_12, %c0_13], %15 {strides = array<i32>} : memref<8x4xf32, #tpu.memory_space<vmem>>, vector<8x4xf32>,
    return
  }
}

</mosaic_0001>

<bundles_post_ra>
// kernel: tpu_custom_call.1
= control target key start
LH: loop header
LB: loop body
LE: loop exit
PB: predicated region body
PF: predicated region fallthrough
CT: control target
= control target key end

     0   :  { %vm29_vm0 = vcmask 261120   ;;  %vm61_vm2 = vcmask 64512   ;;  %vm85_vm3 = vcmask 31744   ;;  %s152_s1 = inlined_call_operand.vmem [shape: f32[32,8], index: 1, kind: input, shape index: {}]   ;;  %s153_s2 = inlined_call_operand.vmem [shape: f32[1,8], index: 2, kind: input, shape index: {}]   ;;  %s154_s0 = inlined_call_operand.vmem [shape: f32[8,32], index: 0, kind: input, shape index: {}]   ;;  %s155_s4 = inlined_call_operand.vmem [shape: f32[1,4], index: 4, kind: input, shape index: {}]   ;;  %s156_s3 = inlined_call_operand.vmem [shape: f32[8,4], index: 3, kind: input, shape index: {}]   ;;  %s157_s5 = inlined_call_operand.vmem [shape: f32[8,4], index: 5, kind: output, shape index: {}]  }
   0x1   :  { %v24_v0 = vld [vmem:[%s152_s1 + $0x18] sm:$0xff]  ;;  %v23_v1 = vld [vmem:[%s152_s1 + $0x10] sm:$0xff]  ;;  %v22_v2 = vld [vmem:[%s152_s1 + $0x8] sm:$0xff] }
   0x2   :  { %45 = vmatpush.msra.mxu0 %v24_v0  ;;  %v21_v3 = vld [vmem:[%s152_s1] sm:$0xff] }
   0x3   :  { %v20_v4 = vld [vmem:[%s154_s0] sm:$0xff] }
   0x4   :  { %46 = vmatpush.msra.mxu0 %v23_v1  ;;  %v56_v5 = vld [vmem:[%s156_s3] sm:$0xff] }
   0x5   :  { %80 = vmatpush.msra.mxu1 %v56_v5  ;;  %v93_v6 = vld [vmem:[%s153_s2] ss:$0 sm:$0xff] }
   0x6   :  { %47 = vmatpush.msra.mxu0 %v22_v2  ;;  %v94_v11 = vld [vmem:[%s155_s4] ss:$0 sm:$0xff] }
   0x8   :  { %48 = vmatpush.msra.mxu0 %v21_v3 }
   0x9   :  { %91 = vmatmul.msk.f32.vlgmr.msra.gmra.mxu0 %vm29_vm0, %v20_v4 }
  0x86   :  { %v50_v7 = vpop.f32.mrf.mxu0 }
  0x87   :  { %v51_v8 = vadd.f32 %v93_v6, %v50_v7 }
  0x89   :  { %v54_v9 = vmul.f32 0.01, %v51_v8  ;;  %vm53_vm1 = vcmp.gt.f32.partialorder %v51_v8, 0.0 }
  0x8b   :  { %v55_v10 = vsel %vm53_vm1, %v51_v8, %v54_v9 }
  0x8c   :  { %92 = vmatmul.msk.f32.vlgmr.msra.gmra.mxu1 %vm61_vm2, %v55_v10 }
 0x109   :  { %v82_v12 = vpop.f32.mrf.mxu1 }
 0x10a   :  { %v83_v13 = vadd.f32 %v94_v11, %v82_v12 }
 0x10c   :  { %86 = vst.msk [vmem:[%s157_s5] sm:$0xff] %vm85_vm3, %v83_v13 }

</bundles_post_ra>
